<compile_context>
chip_gen: v5e
topology: v5e:2x2
jax: 0.10.0
libtpu: 0.0.40
codegen_flags: <defaults>
</compile_context>

<pallas_src>
import functools

import jax
import jax.numpy as jnp
from jax.experimental import pallas as pl
from jax.experimental.pallas import tpu as pltpu


_PALLAS_MIN_BATCH = 2048   # below this, fused jnp beats kernel launch overhead
_MAX_BLOCK_B = 2048        # batch tile cap (lane dim); multiple of 128
_LANE = 128


def _mlp_kernel(xT_ref, w1b1_ref, w2b2_ref, w3b3_ref, oT_ref):
    f_in = xT_ref.shape[0]
    h1_dim = w1b1_ref.shape[0]   # fc1 out == fc2 in (16)
    h2_dim = w2b2_ref.shape[0]   # fc2 out == fc3 in (16)

    xT = xT_ref[...]                                # (f_in, TB)

    # ---- layer 1 ----
    w1 = w1b1_ref[:, :f_in]                         # (16, f_in)
    b1 = w1b1_ref[:, f_in:f_in + 1]                 # (16, 1)
    if f_in == 1:
        # Outer product on the VPU: (16,1) * (1,TB) -> (16,TB).
        # Avoids a K=1 (or zero-padded) MXU matmul entirely.
        h1 = w1 * xT
    else:
        h1 = jnp.dot(w1, xT, preferred_element_type=jnp.float32)
    h1 = jnp.maximum(h1 + b1, 0.0)                  # (16, TB)

    # ---- layer 2 (MXU, N = TB) ----
    w2 = w2b2_ref[:, :h1_dim]                       # (16, 16)
    b2 = w2b2_ref[:, h1_dim:h1_dim + 1]             # (16, 1)
    h2 = jnp.dot(w2, h1, preferred_element_type=jnp.float32) + b2
    h2 = jnp.maximum(h2, 0.0)                       # (16, TB)

    # ---- layer 3 (MXU, N = TB); rows padded to 8 -> full-tile unmasked store ----
    w3 = w3b3_ref[:, :h2_dim]                       # (8, 16), rows 6..7 are zero
    b3 = w3b3_ref[:, h2_dim:h2_dim + 1]             # (8, 1),  rows 6..7 are zero
    y = jnp.dot(w3, h2, preferred_element_type=jnp.float32) + b3
    oT_ref[...] = y.astype(oT_ref.dtype)            # (8, TB): lane+sublane-dense store


def pack_params(w1, b1, w2, b2, w3, b3):
    """Pack PyTorch-layout Linear params (W: [out, in], b: [out]) into the three
    [W | b] slabs the kernel consumes.  The fc3 slab is zero-padded to 8 output
    rows so the kernel's output tile is (8,128)-aligned.  Call ONCE at init."""
    w1b1 = jnp.concatenate([w1, b1[:, None]], axis=1).astype(jnp.float32)
    w2b2 = jnp.concatenate([w2, b2[:, None]], axis=1).astype(jnp.float32)
    w3b3 = jnp.concatenate([w3, b3[:, None]], axis=1).astype(jnp.float32)
    f_out = w3b3.shape[0]
    f_out_pad = max(8, ((f_out + 7) // 8) * 8)
    if f_out_pad != f_out:
        w3b3 = jnp.pad(w3b3, ((0, f_out_pad - f_out), (0, 0)))
    return w1b1, w2b2, w3b3


def _mlp_jnp(x, packed_params):
    """XLA-fused reference / tiny-batch path (identical math, HIGHEST precision
    so results match the kernel's f32 MXU passes).  Returns padded f_out rows."""
    w1b1, w2b2, w3b3 = packed_params
    f_in = x.shape[1]
    h1_dim = w1b1.shape[0]
    h2_dim = w2b2.shape[0]
    hp = jax.lax.Precision.HIGHEST
    w1, b1 = w1b1[:, :f_in], w1b1[:, f_in]
    w2, b2 = w2b2[:, :h1_dim], w2b2[:, h1_dim]
    w3, b3 = w3b3[:, :h2_dim], w3b3[:, h2_dim]
    h = jnp.maximum(jnp.dot(x, w1.T, precision=hp) + b1, 0.0)
    h = jnp.maximum(jnp.dot(h, w2.T, precision=hp) + b2, 0.0)
    return jnp.dot(h, w3.T, precision=hp) + b3


def _choose_block_b(B):
    """Largest lane-aligned tile <= _MAX_BLOCK_B that still leaves >= 2 grid
    steps, so v7x can shard the batch axis across both TensorCores."""
    half = -(-B // 2)                          # ceil(B / 2)
    half_aligned = -(-half // _LANE) * _LANE   # round up to lane multiple
    return max(_LANE, min(_MAX_BLOCK_B, half_aligned))


@functools.partial(jax.jit, static_argnames=("n_outputs", "transposed_output"))
def rotor_model_forward(x, packed_params, n_outputs=6, transposed_output=False):
    """x: (B, n_inputs) float32 -> (B, n_outputs) float32
    (or (n_outputs, B) if transposed_output=True, skipping the final relayout)."""
    w1b1, w2b2, w3b3 = packed_params
    B, f_in = x.shape
    f_out_pad = w3b3.shape[0]

    if B < _PALLAS_MIN_BATCH:
        # Launch + pad + transpose overhead exceeds the math at small B.
        y = _mlp_jnp(x, packed_params)[:, :n_outputs]
        return y.T if transposed_output else y

    block_b = _choose_block_b(B)                 # static (derived from shape)
    b_pad = pl.cdiv(B, block_b) * block_b

    xT = x.T                                     # (f_in, B); free when f_in == 1
    if b_pad != B:                               # one cheap pad only for ragged B
        xT = jnp.pad(xT, ((0, 0), (0, b_pad - B)))
    # TODO(synk): ragged tails could instead be masked in-kernel via scalar
    # prefetch of B, avoiding this pad copy; it is a minor cost at these sizes.

    grid = (b_pad // block_b,)
    const = lambda shape: pl.BlockSpec(shape, lambda i: (0, 0))

    cost = pl.CostEstimate(
        flops=2 * b_pad * (f_in * 16 + 16 * 16 + 16 * f_out_pad),
        transcendentals=0,
        bytes_accessed=4 * b_pad * (f_in + f_out_pad)
                       + 4 * (w1b1.size + w2b2.size + w3b3.size),
    )

    yT = pl.pallas_call(
        _mlp_kernel,
        out_shape=jax.ShapeDtypeStruct((f_out_pad, b_pad), jnp.float32),
        grid_spec=pltpu.PrefetchScalarGridSpec(
            num_scalar_prefetch=0,
            grid=grid,
            in_specs=[
                pl.BlockSpec((f_in, block_b), lambda i: (0, i)),   # streamed batch tile
                const(w1b1.shape),                                  # VMEM-resident
                const(w2b2.shape),
                const(w3b3.shape),
            ],
            out_specs=pl.BlockSpec((f_out_pad, block_b), lambda i: (0, i)),
        ),
        compiler_params=pltpu.CompilerParams(
            dimension_semantics=("parallel",)),   # v7x: shard batch tiles across both TCs
        cost_estimate=cost,
    )(xT, w1b1, w2b2, w3b3)

    yT = yT[:n_outputs, :B]
    if transposed_output:
        return yT                                 # (f_out, B): no relayout
    return yT.T                                   # (B, f_out): layout plumbing only


def init_params(key, n_inputs=1, n_outputs=6):
    """Deterministic nn.Linear-style init in PyTorch layout (W: [out, in], b: [out])."""
    def linear_init(k, fan_in, fan_out):
        kw, kb = jax.random.split(k)
        bound = 1.0 / jnp.sqrt(jnp.float32(fan_in))
        w = jax.random.uniform(kw, (fan_out, fan_in), jnp.float32, -bound, bound)
        b = jax.random.uniform(kb, (fan_out,), jnp.float32, -bound, bound)
        return w, b

    k1, k2, k3 = jax.random.split(key, 3)
    w1, b1 = linear_init(k1, n_inputs, 16)
    w2, b2 = linear_init(k2, 16, 16)
    w3, b3 = linear_init(k3, 16, n_outputs)
    return (w1, b1, w2, b2, w3, b3)


if __name__ == "__main__":
    key = jax.random.PRNGKey(0)
    kx, kp = jax.random.split(key)

    n_inputs, n_outputs = 1, 6
    raw = init_params(kp, n_inputs=n_inputs, n_outputs=n_outputs)
    packed = pack_params(*raw)     # done once, not per call

    # Large batch -> Pallas kernel path (2 grid steps at TB=2048 on this shape).
    B = 4096
    x = jax.random.normal(kx, (B, n_inputs), jnp.float32)
    y = jax.block_until_ready(rotor_model_forward(x, packed, n_outputs=n_outputs))
    y_ref = _mlp_jnp(x, packed)[:, :n_outputs]
    assert y.shape == (B, n_outputs)
    assert jnp.allclose(y, y_ref, atol=1e-5, rtol=1e-5)

    # Transposed-output variant (skips the wrapper relayout).
    yT = jax.block_until_ready(
        rotor_model_forward(x, packed, n_outputs=n_outputs, transposed_output=True))
    assert yT.shape == (n_outputs, B)
    assert jnp.allclose(yT.T, y_ref, atol=1e-5, rtol=1e-5)

    # Ragged batch (not a multiple of the tile) exercises the pad/slice path.
    x2 = jax.random.normal(jax.random.PRNGKey(1), (2501, n_inputs), jnp.float32)
    y2 = jax.block_until_ready(rotor_model_forward(x2, packed, n_outputs=n_outputs))
    assert jnp.allclose(y2, _mlp_jnp(x2, packed)[:, :n_outputs], atol=1e-5, rtol=1e-5)

    # Tiny batch takes the fused-XLA fallback (kernel launch overhead would dominate).
    x3 = jax.random.normal(jax.random.PRNGKey(2), (8, n_inputs), jnp.float32)
    y3 = jax.block_until_ready(rotor_model_forward(x3, packed, n_outputs=n_outputs))
    assert jnp.allclose(y3, _mlp_jnp(x3, packed)[:, :n_outputs], atol=1e-5, rtol=1e-5)

    # TODO(synk): normalization/denormalization constants, train_model, predict and
    # predict_aerodynamic from the PyTorch module are host-side utilities outside
    # forward() and are intentionally not implemented in the kernel.
    print("KERNEL_OK")
</pallas_src>

<mosaic_0001>
module attributes {stable_mosaic.version = 11 : i64} {
  func.func @_mlp_kernel(%arg0: i32, %arg1: memref<1x2048xf32, #tpu.memory_space<vmem>>, %arg2: memref<16x2xf32, #tpu.memory_space<vmem>>, %arg3: memref<16x17xf32, #tpu.memory_space<vmem>>, %arg4: memref<8x17xf32, #tpu.memory_space<vmem>>, %arg5: memref<8x2048xf32, #tpu.memory_space<vmem>>) attributes {dimension_semantics = [#tpu.dimension_semantics<parallel>], iteration_bounds = array<i64: 2>, scalar_prefetch = 0 : i64, scratch_operands = 0 : i64, tpu.core_type = #tpu.core_type<tc>, window_params = [{transform_indices = @transform_0, window_bounds = array<i64: 1, 2048>}, {pipeline_mode = #tpu.pipeline_mode<synchronous>, transform_indices = @transform_1, window_bounds = array<i64: 16, 2>}, {pipeline_mode = #tpu.pipeline_mode<synchronous>, transform_indices = @transform_2, window_bounds = array<i64: 16, 17>}, {pipeline_mode = #tpu.pipeline_mode<synchronous>, transform_indices = @transform_3, window_bounds = array<i64: 8, 17>}, {transform_indices = @transform_4, window_bounds = array<i64: 8, 2048>}]} {
    %c0 = arith.constant 0 : index
    %c0_0 = arith.constant 0 : index
    %0 = vector.load %arg1[%c0, %c0_0] : memref<1x2048xf32, #tpu.memory_space<vmem>>, vector<1x2048xf32>
    %c0_1 = arith.constant 0 : index
    %c0_2 = arith.constant 0 : index
    %1 = vector.load %arg2[%c0_1, %c0_2] : memref<16x2xf32, #tpu.memory_space<vmem>>, vector<16x1xf32>
    %c0_3 = arith.constant 0 : index
    %c1 = arith.constant 1 : index
    %2 = vector.load %arg2[%c0_3, %c1] : memref<16x2xf32, #tpu.memory_space<vmem>>, vector<16x1xf32>
    %3 = vector.broadcast %1 : vector<16x1xf32> to vector<16x2048xf32>
    %4 = vector.broadcast %0 : vector<1x2048xf32> to vector<16x2048xf32>
    %5 = arith.mulf %3, %4 : vector<16x2048xf32>
    %6 = vector.broadcast %2 : vector<16x1xf32> to vector<16x2048xf32>
    %7 = arith.addf %5, %6 : vector<16x2048xf32>
    %cst = arith.constant 0.000000e+00 : f32
    %8 = vector.broadcast %cst : f32 to vector<16x2048xf32>
    %9 = arith.maximumf %7, %8 : vector<16x2048xf32>
    %c0_4 = arith.constant 0 : index
    %c0_5 = arith.constant 0 : index
    %10 = vector.load %arg3[%c0_4, %c0_5] : memref<16x17xf32, #tpu.memory_space<vmem>>, vector<16x16xf32>
    %c0_6 = arith.constant 0 : index
    %c16 = arith.constant 16 : index
    %11 = vector.load %arg3[%c0_6, %c16] : memref<16x17xf32, #tpu.memory_space<vmem>>, vector<16x1xf32>
    %cst_7 = arith.constant dense<0.000000e+00> : vector<16x2048xf32>
    %12 = tpu.matmul %10, %9, %cst_7 {dimension_numbers = #tpu.dot_dimension_numbers<[1], [0], [0], [1], [0, 0, 1, 1], [], []>} : vector<16x16xf32>, vector<16x2048xf32>, vector<16x2048xf32> -> vector<16x2048xf32>
    %13 = vector.broadcast %11 : vector<16x1xf32> to vector<16x2048xf32>
    %14 = arith.addf %12, %13 : vector<16x2048xf32>
    %cst_8 = arith.constant 0.000000e+00 : f32
    %15 = vector.broadcast %cst_8 : f32 to vector<16x2048xf32>
    %16 = arith.maximumf %14, %15 : vector<16x2048xf32>
    %c0_9 = arith.constant 0 : index
    %c0_10 = arith.constant 0 : index
    %17 = vector.load %arg4[%c0_9, %c0_10] : memref<8x17xf32, #tpu.memory_space<vmem>>, vector<8x16xf32>
    %c0_11 = arith.constant 0 : index
    %c16_12 = arith.constant 16 : index
    %18 = vector.load %arg4[%c0_11, %c16_12] : memref<8x17xf32, #tpu.memory_space<vmem>>, vector<8x1xf32>
    %cst_13 = arith.constant dense<0.000000e+00> : vector<8x2048xf32>
    %19 = tpu.matmul %17, %16, %cst_13 {dimension_numbers = #tpu.dot_dimension_numbers<[1], [0], [0], [1], [0, 0, 1, 1], [], []>} : vector<8x16xf32>, vector<16x2048xf32>, vector<8x2048xf32> -> vector<8x2048xf32>
    %20 = vector.broadcast %18 : vector<8x1xf32> to vector<8x2048xf32>
    %21 = arith.addf %19, %20 : vector<8x2048xf32>
    %c0_14 = arith.constant 0 : index
    %c0_15 = arith.constant 0 : index
    %22 = vector.load %arg5[%c0_14, %c0_15] : memref<8x2048xf32, #tpu.memory_space<vmem>>, vector<8x2048xf32>
    tpu.vector_store %arg5[%c0_14, %c0_15], %21 {strides = array<i32>} : memref<8x2048xf32, #tpu.memory_space<vmem>>, vector<8x2048xf32>,
    return
  }
  func.func @transform_0(%arg0: i32) -> (i32, i32) {
    %c0_i32 = arith.constant 0 : i32
    %c0_i32_0 = arith.constant 0 : i32
    return %c0_i32, %arg0 : i32, i32
  }
  func.func @transform_1(%arg0: i32) -> (i32, i32) {
    %c0_i32 = arith.constant 0 : i32
    %c0_i32_0 = arith.constant 0 : i32
    %c0_i32_1 = arith.constant 0 : i32
    return %c0_i32, %c0_i32_0 : i32, i32
  }
  func.func @transform_2(%arg0: i32) -> (i32, i32) {
    %c0_i32 = arith.constant 0 : i32
    %c0_i32_0 = arith.constant 0 : i32
    %c0_i32_1 = arith.constant 0 : i32
    return %c0_i32, %c0_i32_0 : i32, i32
  }
  func.func @transform_3(%arg0: i32) -> (i32, i32) {
    %c0_i32 = arith.constant 0 : i32
    %c0_i32_0 = arith.constant 0 : i32
    %c0_i32_1 = arith.constant 0 : i32
    return %c0_i32, %c0_i32_0 : i32, i32
  }
  func.func @transform_4(%arg0: i32) -> (i32, i32) {
    %c0_i32 = arith.constant 0 : i32
    %c0_i32_0 = arith.constant 0 : i32
    return %c0_i32, %arg0 : i32, i32
  }
}

</mosaic_0001>

<bundles_post_ra>
// kernel: rotor_model_forward.1
= control target key start
LH: loop header
LB: loop body
LE: loop exit
PB: predicated region body
PF: predicated region fallthrough
CT: control target
= control target key end

     0   :  { %9 = vsyncpa [#allocation3], 0  ;;  %s1838_s0 = inlined_call_operand.hbm [shape: f32[1,4096], index: 0, kind: input, shape index: {}]   ;;  %s1839_s1 = inlined_call_operand.vmem [shape: f32[16,2], index: 1, kind: input, shape index: {}]   ;;  %s1840_s2 = inlined_call_operand.vmem [shape: f32[16,17], index: 2, kind: input, shape index: {}]   ;;  %s1841_s3 = inlined_call_operand.hbm [shape: f32[8,17], index: 3, kind: input, shape index: {}]   ;;  %s1842_s4 = inlined_call_operand.vmem [shape: f32[8,4096], index: 4, kind: output, shape index: {}]  }
   0x1   :  { %11 = vsyncpa [#allocation3 + $0x1], 0 }
   0x2   :  { %12 = vsyncpa [#allocation5], 0  ;;  %s1472_s15 = smov 0   ;;  %s1474_s16 = smov 0  }
   0x3   :  { %s1476_s17 = smov 0   ;;  %s1478_s18 = smov 0  }
   0x4 LB: > { %s1224_s19 = sadd.s32 4294967295, %s1441_s18   ;;  %p38_p0 = scmp.ne.s32.totalorder %s1433_s16, %s1429_s15  ;;  %s1441_s18 = sphi %s1478_s18, %s1850_s18   ;;  %s1437_s17 = sphi %s1476_s17, %s1849_s17   ;;  %s1433_s16 = sphi %s1474_s16, %s1848_s16   ;;  %s1429_s15 = sphi %s1472_s15, %s1847_s15  }
   0x5   : > { %p1494_p1 = scmp.eq.s32.totalorder %s1224_s19, 0  ;;  %p1226_p2 = scmp.ge.s32.totalorder %s1441_s18, 1 }
   0x6   : > { %p138_p3 = scmp.lt.s32.totalorder %s1441_s18, 3  ;;  %s156_s24 = sshll.u32 %s1841_s3, 4  ;;  %s157_s24 = int_to_ptr.hbm [resolvable:$true] %s156_s24 }
   0x7   : > { %p1502_p4 = por %p1494_p1, %p38_p0  ;;  %s1443_s26 = smov [#allocation4]  }
   0x8   : > { %p1509_p5 = pnand %p1226_p2, %p138_p3  ;;  %s158_s27 = sshll.u32 %s1443_s26, 4  ;;  %s159_s27 = int_to_ptr.vmem [resolvable:$true] %s158_s27 }
   0x9   : > { %s1518_s28 = sadd.s32 1, %s1441_s18   ;;  %s25_s29 = sadd.s32 1, %s1437_s17 }
   0xa   : > { %p1292_p6 = pneg %p1509_p5  ;;  %s22_s30 = ssub.s32 %s1441_s18, %s1518_s28 }
   0xb   : > { %p23_p8 = scmp.eq.s32.totalorder %s22_s30, 0  ;;  %p32_p9 = scmp.ne.s32.totalorder %s1437_s17, %s1433_s16 }
   0xc   : > { %p1293_p7 = pnand %p1292_p6, %p1494_p1  ;;  %p33_p10 = scmp.eq.s32.totalorder %s1441_s18, 0 }
   0xd   : > { %p1301_p11 = scmp.lt.s32.totalorder %s1441_s18, 2  ;;  %s169_s6 = sand.u32 1, %s1437_s17  }
   0xe   : > { %1295 = dma.hbm_to_vmem [thread:$0]  (!%p1293_p7), %s157_s24, 128, %s159_s27, [#allocation5]  }
   0xf   : > { %s1528_s5 = scalar_select %p23_p8, %s1437_s17, %s25_s29  }
  0x10   : > { %p34_p12 = por %p33_p10, %p32_p9  ;;  %s1229_s7 = sshll.u32 %s169_s6, 4 }
  0x11   : > { %s1230_s8 = sshll.u32 %s1441_s18, 4  ;;  %s173_s12 = scalar_lea.vmem [#allocation2], %s1229_s7 }
  0x12   : > { %s177_s11 = scalar_lea.hbm %s1838_s0, %s1230_s8  ;;  %s181_s13 = sshll.u32 %s173_s12, 4  ;;  %s182_s13 = int_to_ptr.vmem [resolvable:$true] %s181_s13 }
  0x13   : > { %s179_s14 = sshll.u32 %s177_s11, 4  ;;  %p1535_p13 = pnand %p1301_p11, %p34_p12  ;;  %s180_s14 = int_to_ptr.hbm [resolvable:$true] %s179_s14 }
  0x14   : > { %s170_s22 = scalar_lea.sflag [#allocation3], %s169_s6  ;;  %s1373_s23 = sshra.s32 %s180_s14, 4  ;;  %s1374_s23 = int_to_ptr.hbm [resolvable:$true] %s1373_s23 }
  0x15   : > { %s1375_s24 = scalar_lea.hbm %s1374_s23, 16  ;;  %p1377_p2 = pneg %p1535_p13 }
  0x16   : > { %p1376_p0 = scmp.ne.s32.totalorder %s1374_s23, %s1375_s24  ;;  %s1380_s29 = scalar_lea.hbm %s1838_s0, 32 }
  0x17   : > { %p1381_p7 = scmp.lt.s32.totalorder %s1374_s23, %s1838_s0  ;;  %p1382_p8 = scmp.lt.s32.totalorder %s1380_s29, %s1375_s24 }
  0x18   : > { %p1378_p3 = pnand %p1377_p2, %p1376_p0 }
  0x19   : > { %p1383_p9 = por %p1382_p8, %p1381_p7 }
  0x1a   : > { %p1379_p6 = pneg %p1378_p3 }
  0x1c   : > { %p1384_p10 = pnand %p1383_p9, %p1379_p6 }
  0x1e   : > { %1387 = shalt.err (!%p1384_p10)
}
  0x1f   : > { %1299 = dma.hbm_to_vmem [thread:$0]  (!%p1535_p13), %s180_s14, 256, %s182_s13, %s170_s22  }
  0x20   : > { %190 = sbr.rel (%p1509_p5) target bundleno = 507 (0x1fb), region = 36  ;;  %s192_s6 = sand.u32 (!%p1509_p5), 1, %s1433_s16  }
  0x21   : > { %s1552_s8 = sshll.u32 (!%p1509_p5), %s192_s6, 4  ;;  %s193_s9 = scalar_lea.sflag (!%p1509_p5), [#allocation3], %s192_s6 }
  0x22   : > { %s196_s10 = scalar_lea.vmem (!%p1509_p5), [#allocation2], %s1552_s8 }
  0x25   : > { %1420 = dma.done.wait (%p1502_p4), %s193_s9, 256  }
  0x26   : > { %1422 = vsyncadd (%p1502_p4), %s193_s9, 4294967040 }
  0x27   : > { %1424 = dma.done.wait (%p1494_p1), [#allocation5], 128  }
  0x28   : > { %1426 = vsyncadd (%p1494_p1), [#allocation5], 4294967168  ;;  %v1444_v0 = vmov 1   ;;  %v1445_v1 = vmov 0   ;;  %v237_v2 = vld [vmem:[%s1839_s1 + $0x8] sm:$0xff]  ;;  %v236_v3 = vld [vmem:[%s1839_s1] sm:$0xff] }
  0x29   : > { %1340 = vset.pattern.permute.xlu1 %v1444_v0  ;;  %1339 = vset.pattern.permute.xlu0 %v1445_v1  ;;  %v234_v4 = vld [vmem:[%s196_s10] sm:$0xff]  ;;  %v1586_v24 = vld [vmem:[%s196_s10 + $0x8] sm:$0xff]  ;;  %vm398_vm0 = vcmask 130048   ;;  %s1234_s22 = sshll.u32 %s1224_s19, 4 }
  0x2a   : > { %319 = vperm.xlu1 %1340, %v237_v2   ;;  %245 = vperm.xlu0 %1339, %v237_v2   ;;  %v250_v5 = vperm.slane %v234_v4, 0  ;;  %v251_v6 = vperm.slane %v234_v4, 1  ;;  %v252_v7 = vperm.slane %v234_v4, 2  ;;  %v253_v8 = vperm.slane %v234_v4, 3  ;;  %v1619_v59 = vld [vmem:[%s1840_s2] sm:$0xff]  ;;  %p229_p1 = scmp.lt.s32.totalorder %s1234_s22, 31 }
  0x2b   : > { %v254_v11 = vperm.slane %v234_v4, 4  ;;  %v255_v16 = vperm.slane %v234_v4, 5  ;;  %v256_v22 = vperm.slane %v234_v4, 6  ;;  %v257_v23 = vperm.slane %v234_v4, 7 }
  0x2c   : > { %v258_v30 = vperm.slane %v1586_v24, 0  ;;  %v259_v31 = vperm.slane %v1586_v24, 1  ;;  %v260_v32 = vperm.slane %v1586_v24, 2  ;;  %v261_v37 = vperm.slane %v1586_v24, 3  ;;  %s1852_s22 = smov (!%p229_p1, %s1234_s22), 31 }
  0x2d   : > { %s1235_s23 = sshll.u32 %s1852_s22, 3 }
  0x2e   : > { %s1807_s27 = scalar_lea.vmem %s1842_s4, %s1235_s23 }
  0x32   : > { %315 = vperm.xlu1 %1340, %v236_v3   ;;  %240 = vperm.xlu0 %1339, %v236_v3  }
  0x9c   : > { %v1571_v9 = vpop.permute.xlu1 %319  ;;  %v1573_v10 = vpop.permute.xlu0 %245 }
  0x9d   : > { %v298_v12 = vmul.f32 %v250_v5, %v1573_v10  ;;  %v299_v13 = vmul.f32 %v251_v6, %v1573_v10  ;;  %v300_v14 = vmul.f32 %v252_v7, %v1573_v10  ;;  %v301_v15 = vmul.f32 %v253_v8, %v1573_v10 }
  0x9e   : > { %v302_v21 = vmul.f32 %v254_v11, %v1573_v10  ;;  %v303_v29 = vmul.f32 %v255_v16, %v1573_v10  ;;  %v304_v35 = vmul.f32 %v256_v22, %v1573_v10  ;;  %v305_v36 = vmul.f32 %v257_v23, %v1573_v10 }
  0x9f   : > { %v338_v17 = vadd.f32 %v1571_v9, %v298_v12  ;;  %v339_v18 = vadd.f32 %v1571_v9, %v299_v13  ;;  %v340_v19 = vadd.f32 %v1571_v9, %v300_v14  ;;  %v341_v20 = vadd.f32 %v1571_v9, %v301_v15 }
  0xa0   : > { %v342_v34 = vadd.f32 %v1571_v9, %v302_v21  ;;  %v343_v43 = vadd.f32 %v1571_v9, %v303_v29  ;;  %v344_v51 = vadd.f32 %v1571_v9, %v304_v35  ;;  %v306_v53 = vmul.f32 %v258_v30, %v1573_v10 }
  0xa1   : > { %v370_v25 = vmax.f32 %v338_v17, 0.0  ;;  %v371_v26 = vmax.f32 %v339_v18, 0.0  ;;  %v372_v27 = vmax.f32 %v340_v19, 0.0  ;;  %v373_v28 = vmax.f32 %v341_v20, 0.0 }
  0xa2   : > { %v307_v54 = vmul.f32 %v259_v31, %v1573_v10  ;;  %v345_v60 = vadd.f32 %v1571_v9, %v305_v36  ;;  %v308_v61 = vmul.f32 %v260_v32, %v1573_v10  ;;  %v309_v62 = vmul.f32 %v261_v37, %v1573_v10 }
  0xa3   : > { %417 = vmatpush.msra.mxu0 %v370_v25  ;;  %440 = vmatpush.msra.mxu1 %v371_v26  ;;  %v374_v63 = vmax.f32 %v342_v34, 0.0  ;;  %v375_v3 = vmax.f32 %v343_v43, 0.0  ;;  %v263_v34 = vperm.slane %v1586_v24, 5 }
  0xa4   : > { %463 = vmatpush.msra.mxu2 %v372_v27  ;;  %486 = vmatpush.msra.mxu3 %v373_v28  ;;  %v1592_v33 = vpop.permute.xlu0 %240  ;;  %v1602_v42 = vpop.permute.xlu1 %315  ;;  %v377_v13 = vmax.f32 %v345_v60, 0.0  ;;  %v348_v14 = vadd.f32 %v1571_v9, %v308_v61  ;;  %v349_v15 = vadd.f32 %v1571_v9, %v309_v62 }
  0xa5   : > { %v282_v38 = vmul.f32 %v250_v5, %v1592_v33  ;;  %v283_v39 = vmul.f32 %v251_v6, %v1592_v33  ;;  %v284_v40 = vmul.f32 %v252_v7, %v1592_v33  ;;  %v285_v41 = vmul.f32 %v253_v8, %v1592_v33 }
  0xa6   : > { %v286_v44 = vmul.f32 %v254_v11, %v1592_v33  ;;  %v287_v45 = vmul.f32 %v255_v16, %v1592_v33  ;;  %v288_v46 = vmul.f32 %v256_v22, %v1592_v33  ;;  %v289_v52 = vmul.f32 %v257_v23, %v1592_v33 }
  0xa7   : > { %v322_v47 = vadd.f32 %v1602_v42, %v282_v38  ;;  %v323_v48 = vadd.f32 %v1602_v42, %v283_v39  ;;  %v324_v49 = vadd.f32 %v1602_v42, %v284_v40  ;;  %v325_v50 = vadd.f32 %v1602_v42, %v285_v41 }
  0xa8   : > { %v326_v0 = vadd.f32 %v1602_v42, %v286_v44  ;;  %v327_v1 = vadd.f32 %v1602_v42, %v287_v45  ;;  %v328_v2 = vadd.f32 %v1602_v42, %v288_v46  ;;  %v329_v4 = vadd.f32 %v1602_v42, %v289_v52 }
  0xa9   : > { %v354_v55 = vmax.f32 %v322_v47, 0.0  ;;  %v355_v56 = vmax.f32 %v323_v48, 0.0  ;;  %v356_v57 = vmax.f32 %v324_v49, 0.0  ;;  %v357_v58 = vmax.f32 %v325_v50, 0.0 }
  0xaa   : > { %v290_v5 = vmul.f32 %v258_v30, %v1592_v33  ;;  %v291_v6 = vmul.f32 %v259_v31, %v1592_v33  ;;  %v376_v7 = vmax.f32 %v344_v51, 0.0  ;;  %v346_v8 = vadd.f32 %v1571_v9, %v306_v53 }
  0xab   : > { %418 = vmatpush.msra.mxu0 %v354_v55  ;;  %441 = vmatpush.msra.mxu1 %v355_v56  ;;  %v347_v11 = vadd.f32 %v1571_v9, %v307_v54  ;;  %v292_v12 = vmul.f32 %v260_v32, %v1592_v33  ;;  %v293_v16 = vmul.f32 %v261_v37, %v1592_v33  ;;  %v358_v17 = vmax.f32 %v326_v0, 0.0  ;;  %v1653_v37 = vld [vmem:[%s1840_s2 + $0x8] sm:$0xff] }
  0xac   : > { %464 = vmatpush.msra.mxu2 %v356_v57  ;;  %487 = vmatpush.msra.mxu3 %v357_v58  ;;  %v359_v18 = vmax.f32 %v327_v1, 0.0  ;;  %v330_v19 = vadd.f32 %v1602_v42, %v290_v5  ;;  %v331_v20 = vadd.f32 %v1602_v42, %v291_v6  ;;  %v360_v21 = vmax.f32 %v328_v2, 0.0 }
  0xad   : > { %1236 = vmatmul.msk.f32.vlgmr.msra.gmra.mxu0 %vm398_vm0, %v1619_v59  ;;  %1238 = vmatmul.msk.f32.vlgmr.msra.gmra.mxu1 %vm398_vm0, %v1619_v59  ;;  %v361_v22 = vmax.f32 %v329_v4, 0.0  ;;  %v332_v23 = vadd.f32 %v1602_v42, %v292_v12  ;;  %v333_v25 = vadd.f32 %v1602_v42, %v293_v16  ;;  %v378_v26 = vmax.f32 %v346_v8, 0.0 }
  0xae   : > { %1240 = vmatmul.msk.f32.vlgmr.msra.gmra.mxu2 %vm398_vm0, %v1619_v59  ;;  %1242 = vmatmul.msk.f32.vlgmr.msra.gmra.mxu3 %vm398_vm0, %v1619_v59  ;;  %v379_v27 = vmax.f32 %v347_v11, 0.0  ;;  %v380_v28 = vmax.f32 %v348_v14, 0.0  ;;  %v381_v29 = vmax.f32 %v349_v15, 0.0  ;;  %v362_v30 = vmax.f32 %v330_v19, 0.0  ;;  %v1739_v15 = vld [vmem:[#allocation4] sm:$0xff] }
  0xaf   : > { %509 = vmatpush.msrb.mxu0 %v374_v63  ;;  %532 = vmatpush.msrb.mxu1 %v375_v3  ;;  %v363_v31 = vmax.f32 %v331_v20, 0.0  ;;  %v262_v32 = vperm.slane %v1586_v24, 4  ;;  %v364_v35 = vmax.f32 %v332_v23, 0.0  ;;  %v365_v36 = vmax.f32 %v333_v25, 0.0 }
  0xb0   : > { %555 = vmatpush.msrb.mxu2 %v376_v7  ;;  %578 = vmatpush.msrb.mxu3 %v377_v13  ;;  %v264_v38 = vperm.slane %v1586_v24, 6  ;;  %v265_v39 = vperm.slane %v1586_v24, 7  ;;  %v311_v41 = vmul.f32 %v263_v34, %v1573_v10  ;;  %v295_v45 = vmul.f32 %v263_v34, %v1592_v33 }
  0xb1   : > { %510 = vmatpush.msrb.mxu0 %v358_v17  ;;  %533 = vmatpush.msrb.mxu1 %v359_v18  ;;  %v310_v40 = vmul.f32 %v262_v32, %v1573_v10  ;;  %v294_v44 = vmul.f32 %v262_v32, %v1592_v33  ;;  %v1446_v46 = vmov 16  }
  0xb2   : > { %556 = vmatpush.msrb.mxu2 %v360_v21  ;;  %579 = vmatpush.msrb.mxu3 %v361_v22  ;;  %v312_v24 = vmul.f32 %v264_v38, %v1573_v10  ;;  %v313_v43 = vmul.f32 %v265_v39, %v1573_v10  ;;  %v296_v47 = vmul.f32 %v264_v38, %v1592_v33 }
  0xb3   : > { %601 = vmatpush.msra.mxu0 %v378_v26  ;;  %624 = vmatpush.msra.mxu1 %v379_v27  ;;  %v297_v48 = vmul.f32 %v265_v39, %v1592_v33  ;;  %v350_v49 = vadd.f32 %v1571_v9, %v310_v40  ;;  %v351_v50 = vadd.f32 %v1571_v9, %v311_v41 }
  0xb4   : > { %647 = vmatpush.msra.mxu2 %v380_v28  ;;  %670 = vmatpush.msra.mxu3 %v381_v29  ;;  %v352_v51 = vadd.f32 %v1571_v9, %v312_v24  ;;  %v353_v10 = vadd.f32 %v1571_v9, %v313_v43  ;;  %v334_v52 = vadd.f32 %v1602_v42, %v294_v44 }
  0xb5   : > { %602 = vmatpush.msra.mxu0 %v362_v30  ;;  %625 = vmatpush.msra.mxu1 %v363_v31  ;;  %v335_v53 = vadd.f32 %v1602_v42, %v295_v45  ;;  %v336_v54 = vadd.f32 %v1602_v42, %v296_v47  ;;  %v337_v55 = vadd.f32 %v1602_v42, %v297_v48  ;;  %v382_v33 = vmax.f32 %v350_v49, 0.0 }
  0xb6   : > { %648 = vmatpush.msra.mxu2 %v364_v35  ;;  %671 = vmatpush.msra.mxu3 %v365_v36  ;;  %v383_v56 = vmax.f32 %v351_v50, 0.0  ;;  %v384_v9 = vmax.f32 %v352_v51, 0.0  ;;  %v385_v57 = vmax.f32 %v353_v10, 0.0  ;;  %v366_v58 = vmax.f32 %v334_v52, 0.0 }
  0xb7   : > { %1237 = vmatmul.msk.f32.gmra.mxu0 %vm398_vm0, %v1653_v37  ;;  %1239 = vmatmul.msk.f32.gmra.mxu1 %vm398_vm0, %v1653_v37  ;;  %v367_v42 = vmax.f32 %v335_v53, 0.0  ;;  %v368_v60 = vmax.f32 %v336_v54, 0.0  ;;  %v369_v61 = vmax.f32 %v337_v55, 0.0 }
  0xb8   : > { %1241 = vmatmul.msk.f32.gmra.mxu2 %vm398_vm0, %v1653_v37  ;;  %1243 = vmatmul.msk.f32.gmra.mxu3 %vm398_vm0, %v1653_v37 }
  0xb9   : > { %1341 = vset.pattern.permute.xlu2 %v1446_v46  ;;  %1342 = vset.pattern.permute.xlu0 %v1446_v46 }
  0xba   : > { %395 = vperm.xlu2 %1341, %v1653_v37   ;;  %806 = vperm.xlu0 %1342, %v1739_v15  }
  0xbf   : > { %1244 = vmatmul.msk.f32.vlgmr.msrb.gmra.mxu0 %vm398_vm0, %v1619_v59  ;;  %1246 = vmatmul.msk.f32.vlgmr.msrb.gmra.mxu1 %vm398_vm0, %v1619_v59 }
  0xc0   : > { %1248 = vmatmul.msk.f32.vlgmr.msrb.gmra.mxu2 %vm398_vm0, %v1619_v59  ;;  %1250 = vmatmul.msk.f32.vlgmr.msrb.gmra.mxu3 %vm398_vm0, %v1619_v59 }
  0xc1   : > { %693 = vmatpush.msrb.mxu0 %v382_v33  ;;  %716 = vmatpush.msrb.mxu1 %v383_v56 }
  0xc2   : > { %739 = vmatpush.msrb.mxu2 %v384_v9  ;;  %762 = vmatpush.msrb.mxu3 %v385_v57 }
  0xc3   : > { %694 = vmatpush.msrb.mxu0 %v366_v58  ;;  %717 = vmatpush.msrb.mxu1 %v367_v42 }
  0xc4   : > { %740 = vmatpush.msrb.mxu2 %v368_v60  ;;  %763 = vmatpush.msrb.mxu3 %v369_v61 }
  0xc5   : > { %390 = vperm.xlu2 %1341, %v1619_v59  }
  0xc7   : > { %1245 = vmatmul.msk.f32.gmra.mxu0 %vm398_vm0, %v1653_v37  ;;  %1247 = vmatmul.msk.f32.gmra.mxu1 %vm398_vm0, %v1653_v37 }
  0xc8   : > { %1249 = vmatmul.msk.f32.gmra.mxu2 %vm398_vm0, %v1653_v37  ;;  %1251 = vmatmul.msk.f32.gmra.mxu3 %vm398_vm0, %v1653_v37 }
  0xcf   : > { %1252 = vmatmul.msk.f32.vlgmr.msra.gmra.mxu0 %vm398_vm0, %v1619_v59  ;;  %1254 = vmatmul.msk.f32.vlgmr.msra.gmra.mxu1 %vm398_vm0, %v1619_v59 }
  0xd0   : > { %1256 = vmatmul.msk.f32.vlgmr.msra.gmra.mxu2 %vm398_vm0, %v1619_v59  ;;  %1258 = vmatmul.msk.f32.vlgmr.msra.gmra.mxu3 %vm398_vm0, %v1619_v59 }
  0xd7   : > { %1253 = vmatmul.msk.f32.gmra.mxu0 %vm398_vm0, %v1653_v37  ;;  %1255 = vmatmul.msk.f32.gmra.mxu1 %vm398_vm0, %v1653_v37 }
  0xd8   : > { %1257 = vmatmul.msk.f32.gmra.mxu2 %vm398_vm0, %v1653_v37  ;;  %1259 = vmatmul.msk.f32.gmra.mxu3 %vm398_vm0, %v1653_v37 }
  0xdf   : > { %1260 = vmatmul.msk.f32.vlgmr.msrb.gmra.mxu0 %vm398_vm0, %v1619_v59  ;;  %1262 = vmatmul.msk.f32.vlgmr.msrb.gmra.mxu1 %vm398_vm0, %v1619_v59 }
  0xe0   : > { %1264 = vmatmul.msk.f32.vlgmr.msrb.gmra.mxu2 %vm398_vm0, %v1619_v59  ;;  %1266 = vmatmul.msk.f32.vlgmr.msrb.gmra.mxu3 %vm398_vm0, %v1619_v59 }
  0xe7   : > { %1261 = vmatmul.msk.f32.gmra.mxu0 %vm398_vm0, %v1653_v37  ;;  %1263 = vmatmul.msk.f32.gmra.mxu1 %vm398_vm0, %v1653_v37 }
  0xe8   : > { %1265 = vmatmul.msk.f32.gmra.mxu2 %vm398_vm0, %v1653_v37  ;;  %1267 = vmatmul.msk.f32.gmra.mxu3 %vm398_vm0, %v1653_v37 }
 0x114   : > { %v1731_v62 = vpop.permute.xlu2 %395 }
 0x11f   : > { %v1733_v3 = vpop.permute.xlu2 %390 }
 0x12a   : > { %v420_v63 = vpop.f32.mrf.mxu0  ;;  %v443_v0 = vpop.f32.mrf.mxu1 }
 0x12b   : > { %v421_v59 = vadd.f32 %v420_v63, %v1733_v3  ;;  %v444_v4 = vadd.f32 %v443_v0, %v1733_v3 }
 0x12d   : > { %v771_v13 = vmax.f32 %v421_v59, 0.0  ;;  %v772_v14 = vmax.f32 %v444_v4, 0.0 }
 0x131   : > { %v466_v1 = vpop.f32.mrf.mxu2  ;;  %v489_v2 = vpop.f32.mrf.mxu3 }
 0x132   : > { %v467_v16 = vadd.f32 %v466_v1, %v1733_v3  ;;  %v490_v19 = vadd.f32 %v489_v2, %v1733_v3 }
 0x134   : > { %v423_v5 = vpop.f32.mrf.mxu0  ;;  %v446_v6 = vpop.f32.mrf.mxu1  ;;  %v773_v27 = vmax.f32 %v467_v16, 0.0  ;;  %v774_v28 = vmax.f32 %v490_v19, 0.0 }
 0x135   : > { %v424_v7 = vadd.f32 %v423_v5, %v1731_v62  ;;  %v447_v8 = vadd.f32 %v446_v6, %v1731_v62 }
 0x137   : > { %v787_v11 = vmax.f32 %v424_v7, 0.0  ;;  %v788_v12 = vmax.f32 %v447_v8, 0.0 }
 0x139   : > { %825 = vmatpush.msra.mxu0 %v787_v11  ;;  %845 = vmatpush.msra.mxu1 %v788_v12 }
 0x13b   : > { %v469_v17 = vpop.f32.mrf.mxu2  ;;  %v492_v18 = vpop.f32.mrf.mxu3  ;;  %826 = vmatpush.msra.mxu0 %v771_v13  ;;  %846 = vmatpush.msra.mxu1 %v772_v14 }
 0x13c   : > { %v470_v20 = vadd.f32 %v469_v17, %v1731_v62  ;;  %v493_v21 = vadd.f32 %v492_v18, %v1731_v62  ;;  %v512_v22 = vpop.f32.mrf.mxu0  ;;  %v535_v23 = vpop.f32.mrf.mxu1  ;;  %1268 = vmatmul.msk.f32.vlgmr.msra.gmra.mxu0 %vm398_vm0, %v1739_v15  ;;  %1269 = vmatmul.msk.f32.vlgmr.msra.gmra.mxu1 %vm398_vm0, %v1739_v15 }
 0x13d   : > { %v513_v29 = vadd.f32 %v512_v22, %v1733_v3  ;;  %v536_v30 = vadd.f32 %v535_v23, %v1733_v3 }
 0x13e   : > { %v789_v25 = vmax.f32 %v470_v20, 0.0  ;;  %v790_v26 = vmax.f32 %v493_v21, 0.0 }
 0x13f   : > { %v775_v38 = vmax.f32 %v513_v29, 0.0  ;;  %v776_v39 = vmax.f32 %v536_v30, 0.0 }
 0x140   : > { %865 = vmatpush.msra.mxu2 %v789_v25  ;;  %885 = vmatpush.msra.mxu3 %v790_v26 }
 0x142   : > { %866 = vmatpush.msra.mxu2 %v773_v27  ;;  %886 = vmatpush.msra.mxu3 %v774_v28 }
 0x143   : > { %v558_v31 = vpop.f32.mrf.mxu2  ;;  %v581_v32 = vpop.f32.mrf.mxu3  ;;  %1270 = vmatmul.msk.f32.vlgmr.msra.gmra.mxu2 %vm398_vm0, %v1739_v15  ;;  %1271 = vmatmul.msk.f32.vlgmr.msra.gmra.mxu3 %vm398_vm0, %v1739_v15 }
 0x144   : > { %v515_v34 = vpop.f32.mrf.mxu0  ;;  %v538_v35 = vpop.f32.mrf.mxu1  ;;  %v559_v24 = vadd.f32 %v558_v31, %v1733_v3  ;;  %v582_v45 = vadd.f32 %v581_v32, %v1733_v3 }
 0x145   : > { %v516_v36 = vadd.f32 %v515_v34, %v1731_v62  ;;  %v539_v37 = vadd.f32 %v538_v35, %v1731_v62 }
 0x146   : > { %v777_v10 = vmax.f32 %v559_v24, 0.0  ;;  %v778_v52 = vmax.f32 %v582_v45, 0.0 }
 0x147   : > { %v791_v40 = vmax.f32 %v516_v36, 0.0  ;;  %v792_v41 = vmax.f32 %v539_v37, 0.0 }
 0x149   : > { %905 = vmatpush.msrb.mxu0 %v791_v40  ;;  %925 = vmatpush.msrb.mxu1 %v792_v41 }
 0x14b   : > { %v561_v43 = vpop.f32.mrf.mxu2  ;;  %v584_v44 = vpop.f32.mrf.mxu3  ;;  %906 = vmatpush.msrb.mxu0 %v775_v38  ;;  %926 = vmatpush.msrb.mxu1 %v776_v39 }
 0x14c   : > { %v562_v46 = vadd.f32 %v561_v43, %v1731_v62  ;;  %v585_v47 = vadd.f32 %v584_v44, %v1731_v62  ;;  %v604_v48 = vpop.f32.mrf.mxu0  ;;  %v627_v49 = vpop.f32.mrf.mxu1  ;;  %1272 = vmatmul.msk.f32.vlgmr.msrb.gmra.mxu0 %vm398_vm0, %v1739_v15  ;;  %1273 = vmatmul.msk.f32.vlgmr.msrb.gmra.mxu1 %vm398_vm0, %v1739_v15 }
 0x14d   : > { %v605_v56 = vadd.f32 %v604_v48, %v1733_v3  ;;  %v628_v9 = vadd.f32 %v627_v49, %v1733_v3 }
 0x14e   : > { %v793_v50 = vmax.f32 %v562_v46, 0.0  ;;  %v794_v51 = vmax.f32 %v585_v47, 0.0 }
 0x14f   : > { %v779_v61 = vmax.f32 %v605_v56, 0.0  ;;  %v780_v63 = vmax.f32 %v628_v9, 0.0 }
 0x150   : > { %945 = vmatpush.msrb.mxu2 %v793_v50  ;;  %965 = vmatpush.msrb.mxu3 %v794_v51 }
 0x152   : > { %946 = vmatpush.msrb.mxu2 %v777_v10  ;;  %966 = vmatpush.msrb.mxu3 %v778_v52 }
 0x153   : > { %v650_v53 = vpop.f32.mrf.mxu2  ;;  %v673_v54 = vpop.f32.mrf.mxu3  ;;  %1274 = vmatmul.msk.f32.vlgmr.msrb.gmra.mxu2 %vm398_vm0, %v1739_v15  ;;  %1275 = vmatmul.msk.f32.vlgmr.msrb.gmra.mxu3 %vm398_vm0, %v1739_v15 }
 0x154   : > { %v607_v55 = vpop.f32.mrf.mxu0  ;;  %v630_v33 = vpop.f32.mrf.mxu1  ;;  %v651_v0 = vadd.f32 %v650_v53, %v1733_v3  ;;  %v674_v59 = vadd.f32 %v673_v54, %v1733_v3 }
 0x155   : > { %v608_v57 = vadd.f32 %v607_v55, %v1731_v62  ;;  %v631_v58 = vadd.f32 %v630_v33, %v1731_v62 }
 0x156   : > { %v781_v12 = vmax.f32 %v651_v0, 0.0  ;;  %v782_v13 = vmax.f32 %v674_v59, 0.0 }
 0x157   : > { %v795_v42 = vmax.f32 %v608_v57, 0.0  ;;  %v796_v60 = vmax.f32 %v631_v58, 0.0 }
 0x159   : > { %985 = vmatpush.msra.mxu0 %v795_v42  ;;  %1005 = vmatpush.msra.mxu1 %v796_v60 }
 0x15b   : > { %v653_v1 = vpop.f32.mrf.mxu2  ;;  %v676_v2 = vpop.f32.mrf.mxu3  ;;  %986 = vmatpush.msra.mxu0 %v779_v61  ;;  %1006 = vmatpush.msra.mxu1 %v780_v63 }
 0x15c   : > { %v654_v4 = vadd.f32 %v653_v1, %v1731_v62  ;;  %v677_v5 = vadd.f32 %v676_v2, %v1731_v62  ;;  %v696_v6 = vpop.f32.mrf.mxu0  ;;  %v719_v7 = vpop.f32.mrf.mxu1  ;;  %1276 = vmatmul.msk.f32.vlgmr.msra.gmra.mxu0 %vm398_vm0, %v1739_v15  ;;  %1277 = vmatmul.msk.f32.vlgmr.msra.gmra.mxu1 %vm398_vm0, %v1739_v15 }
 0x15d   : > { %v697_v19 = vadd.f32 %v696_v6, %v1733_v3  ;;  %v720_v20 = vadd.f32 %v719_v7, %v1733_v3 }
 0x15e   : > { %v797_v8 = vmax.f32 %v654_v4, 0.0  ;;  %v798_v11 = vmax.f32 %v677_v5, 0.0 }
 0x15f   : > { %v783_v26 = vmax.f32 %v697_v19, 0.0  ;;  %v784_v27 = vmax.f32 %v720_v20, 0.0 }
 0x160   : > { %1025 = vmatpush.msra.mxu2 %v797_v8  ;;  %1045 = vmatpush.msra.mxu3 %v798_v11 }
 0x162   : > { %1026 = vmatpush.msra.mxu2 %v781_v12  ;;  %1046 = vmatpush.msra.mxu3 %v782_v13 }
 0x163   : > { %v742_v14 = vpop.f32.mrf.mxu2  ;;  %v765_v16 = vpop.f32.mrf.mxu3  ;;  %1278 = vmatmul.msk.f32.vlgmr.msra.gmra.mxu2 %vm398_vm0, %v1739_v15  ;;  %1279 = vmatmul.msk.f32.vlgmr.msra.gmra.mxu3 %vm398_vm0, %v1739_v15 }
 0x164   : > { %v699_v17 = vpop.f32.mrf.mxu0  ;;  %v722_v18 = vpop.f32.mrf.mxu1  ;;  %v743_v28 = vadd.f32 %v742_v14, %v1733_v3  ;;  %v766_v31 = vadd.f32 %v765_v16, %v1733_v3 }
 0x165   : > { %v700_v21 = vadd.f32 %v699_v17, %v1731_v62  ;;  %v723_v22 = vadd.f32 %v722_v18, %v1731_v62 }
 0x166   : > { %v785_v37 = vmax.f32 %v743_v28, 0.0  ;;  %v786_v38 = vmax.f32 %v766_v31, 0.0 }
 0x167   : > { %v799_v23 = vmax.f32 %v700_v21, 0.0  ;;  %v800_v25 = vmax.f32 %v723_v22, 0.0 }
 0x169   : > { %1065 = vmatpush.msrb.mxu0 %v799_v23  ;;  %1085 = vmatpush.msrb.mxu1 %v800_v25 }
 0x16b   : > { %v745_v29 = vpop.f32.mrf.mxu2  ;;  %v768_v30 = vpop.f32.mrf.mxu3  ;;  %1066 = vmatpush.msrb.mxu0 %v783_v26  ;;  %1086 = vmatpush.msrb.mxu1 %v784_v27 }
 0x16c   : > { %v746_v32 = vadd.f32 %v745_v29, %v1731_v62  ;;  %v769_v34 = vadd.f32 %v768_v30, %v1731_v62  ;;  %1280 = vmatmul.msk.f32.vlgmr.msrb.gmra.mxu0 %vm398_vm0, %v1739_v15  ;;  %1281 = vmatmul.msk.f32.vlgmr.msrb.gmra.mxu1 %vm398_vm0, %v1739_v15  ;;  %v807_v62 = vpop.permute.xlu0 %806 }
 0x16e   : > { %v801_v35 = vmax.f32 %v746_v32, 0.0  ;;  %v802_v36 = vmax.f32 %v769_v34, 0.0 }
 0x170   : > { %1105 = vmatpush.msrb.mxu2 %v801_v35  ;;  %1125 = vmatpush.msrb.mxu3 %v802_v36 }
 0x172   : > { %1106 = vmatpush.msrb.mxu2 %v785_v37  ;;  %1126 = vmatpush.msrb.mxu3 %v786_v38 }
 0x173   : > { %1282 = vmatmul.msk.f32.vlgmr.msrb.gmra.mxu2 %vm398_vm0, %v1739_v15  ;;  %1283 = vmatmul.msk.f32.vlgmr.msrb.gmra.mxu3 %vm398_vm0, %v1739_v15 }
 0x1b9   : > { %v828_v3 = vpop.f32.mrf.mxu0  ;;  %v848_v39 = vpop.f32.mrf.mxu1 }
 0x1ba   : > { %v829_v15 = vadd.f32 %v828_v3, %v807_v62  ;;  %v849_v40 = vadd.f32 %v848_v39, %v807_v62 }
 0x1bc   : > { %1131 = vst [vmem:[%s1807_s27] sm:$0xff] %v829_v15 }
 0x1bd   : > { %1132 = vst [vmem:[%s1807_s27 + $0x8] sm:$0xff] %v849_v40 }
 0x1c6   : > { %v868_v41 = vpop.f32.mrf.mxu2  ;;  %v888_v24 = vpop.f32.mrf.mxu3 }
 0x1c7   : > { %v869_v43 = vadd.f32 %v868_v41, %v807_v62  ;;  %v889_v44 = vadd.f32 %v888_v24, %v807_v62 }
 0x1c9   : > { %1133 = vst [vmem:[%s1807_s27 + $0x10] sm:$0xff] %v869_v43  ;;  %v908_v45 = vpop.f32.mrf.mxu0  ;;  %v928_v46 = vpop.f32.mrf.mxu1 }
 0x1ca   : > { %1134 = vst [vmem:[%s1807_s27 + $0x18] sm:$0xff] %v889_v44  ;;  %v909_v47 = vadd.f32 %v908_v45, %v807_v62  ;;  %v929_v48 = vadd.f32 %v928_v46, %v807_v62 }
 0x1cc   : > { %1135 = vst [vmem:[%s1807_s27 + $0x20] sm:$0xff] %v909_v47 }
 0x1cd   : > { %1136 = vst [vmem:[%s1807_s27 + $0x28] sm:$0xff] %v929_v48 }
 0x1d6   : > { %v948_v49 = vpop.f32.mrf.mxu2  ;;  %v968_v50 = vpop.f32.mrf.mxu3 }
 0x1d7   : > { %v949_v51 = vadd.f32 %v948_v49, %v807_v62  ;;  %v969_v10 = vadd.f32 %v968_v50, %v807_v62 }
 0x1d9   : > { %1137 = vst [vmem:[%s1807_s27 + $0x30] sm:$0xff] %v949_v51  ;;  %v988_v52 = vpop.f32.mrf.mxu0  ;;  %v1008_v53 = vpop.f32.mrf.mxu1 }
 0x1da   : > { %1138 = vst [vmem:[%s1807_s27 + $0x38] sm:$0xff] %v969_v10  ;;  %v989_v54 = vadd.f32 %v988_v52, %v807_v62  ;;  %v1009_v55 = vadd.f32 %v1008_v53, %v807_v62 }
 0x1dc   : > { %1139 = vst [vmem:[%s1807_s27 + $0x40] sm:$0xff] %v989_v54 }
 0x1dd   : > { %1140 = vst [vmem:[%s1807_s27 + $0x48] sm:$0xff] %v1009_v55 }
 0x1e6   : > { %v1028_v33 = vpop.f32.mrf.mxu2  ;;  %v1048_v56 = vpop.f32.mrf.mxu3 }
 0x1e7   : > { %v1029_v9 = vadd.f32 %v1028_v33, %v807_v62  ;;  %v1049_v57 = vadd.f32 %v1048_v56, %v807_v62 }
 0x1e9   : > { %1141 = vst [vmem:[%s1807_s27 + $0x50] sm:$0xff] %v1029_v9  ;;  %v1068_v58 = vpop.f32.mrf.mxu0  ;;  %v1088_v42 = vpop.f32.mrf.mxu1 }
 0x1ea   : > { %1142 = vst [vmem:[%s1807_s27 + $0x58] sm:$0xff] %v1049_v57  ;;  %v1069_v60 = vadd.f32 %v1068_v58, %v807_v62  ;;  %v1089_v61 = vadd.f32 %v1088_v42, %v807_v62 }
 0x1ec   : > { %1143 = vst [vmem:[%s1807_s27 + $0x60] sm:$0xff] %v1069_v60 }
 0x1ed   : > { %1144 = vst [vmem:[%s1807_s27 + $0x68] sm:$0xff] %v1089_v61 }
 0x1f6   : > { %v1108_v63 = vpop.f32.mrf.mxu2  ;;  %v1128_v0 = vpop.f32.mrf.mxu3 }
 0x1f7   : > { %v1109_v1 = vadd.f32 %v1108_v63, %v807_v62  ;;  %v1129_v2 = vadd.f32 %v1128_v0, %v807_v62 }
 0x1f9   : > { %1145 = vst [vmem:[%s1807_s27 + $0x70] sm:$0xff] %v1109_v1 }
 0x1fa   : > { %1146 = vst [vmem:[%s1807_s27 + $0x78] sm:$0xff] %v1129_v2 }
 0x1fb PF: > { %p15_p4 = scmp.ge.s32.totalorder %s1518_s28, 4   ;;  %s1847_s15 = smov %s1433_s16 }
 0x1fc   : > { %s1848_s16 = smov %s1437_s17  ;;  %s1849_s17 = smov %s1528_s5 }
 0x1fd   : > { %s1850_s18 = smov %s1518_s28  ;;  %17 = sbr.rel (!%p15_p4) target bundleno = 4 (0x4), region = 80 }
 0x202   :  { %1169 = vsyncpa [#allocation3], 1 }
 0x203   :  { %1171 = vsyncpa [#allocation3 + $0x1], 1 }
 0x204   :  { %1172 = vsyncpa [#allocation5], 1 }

</bundles_post_ra>
